<compile_context>
chip_gen: v6e
topology: v6e:2x2x1
jax: 0.10.0
libtpu: 0.0.40
codegen_flags: <defaults>
</compile_context>

<pallas_src>
import functools

import numpy as np
import jax
import jax.numpy as jnp
from jax.experimental import pallas as pl
from jax.experimental.pallas import tpu as pltpu

C_OUT = 32       # conv1 output channels (fixed by the module)
FC_HIDDEN = 128  # fc1 hidden size      (fixed by the module)
LANE = 128       # TPU lane width; only fc2's N is padded to this


def _round_up(n, m):
    return ((n + m - 1) // m) * m


# --------------------------------------------------------------------------
# Kernel 1: conv3x3 (im2col matmul per pool offset) + 2x2 maxpool + bias + ReLU.
# K = Cin*9 is fed unpadded (MXU pads internally); only 32 real channels stored.
# --------------------------------------------------------------------------
def conv_pool_kernel(p_ref, w_ref, b_ref, o_ref):
    # p_ref: (4, tm, F) bf16  im2col patches, one slab per 2x2-pool offset
    # w_ref: (F, 32)   bf16  conv weight (K unpadded)
    # b_ref: (1, 32)   f32   conv bias
    # o_ref: (tm, 32)  bf16  pooled + ReLU activations, row = b*S + s
    w = w_ref[...]
    m = jnp.dot(p_ref[0], w, preferred_element_type=jnp.float32)
    for j in range(1, 4):
        m = jnp.maximum(m, jnp.dot(p_ref[j], w, preferred_element_type=jnp.float32))
    # Bias is shared by all pool offsets -> add after the max; relu(max)==max(relu).
    o_ref[...] = jnp.maximum(m + b_ref[...], 0.0).astype(o_ref.dtype)


# --------------------------------------------------------------------------
# Kernel 2: fc1 + ReLU + fc2, K-tiled over fc1 in-features, f32 accumulator.
# --------------------------------------------------------------------------
def mlp_kernel(f_ref, w1_ref, b1_ref, w2_ref, b2_ref, o_ref, acc_ref):
    # f_ref : (B, tk)        bf16  pooled feature K-slice
    # w1_ref: (tk, 128)      bf16  permuted fc1 weight K-slice
    # b1_ref: (1, 128)       f32
    # w2_ref: (128, nc_pad)  bf16
    # b2_ref: (1, nc_pad)    f32
    # o_ref : (B, nc_pad)    f32   padded logits
    # acc_ref: (B, 128)      f32   VMEM accumulator (resident across K steps)
    k = pl.program_id(0)

    @pl.when(k == 0)
    def _():
        acc_ref[...] = jnp.zeros_like(acc_ref)

    acc_ref[...] += jnp.dot(f_ref[...], w1_ref[...],
                            preferred_element_type=jnp.float32)

    @pl.when(k == pl.num_programs(0) - 1)
    def _():
        h = jnp.maximum(acc_ref[...] + b1_ref[...], 0.0)
        o = jnp.dot(h.astype(w2_ref.dtype), w2_ref[...],
                    preferred_element_type=jnp.float32) + b2_ref[...]
        o_ref[...] = o.astype(o_ref.dtype)


# --------------------------------------------------------------------------
# Wrapper (JAX glue: im2col gather, bf16 casts, parameter layout plumbing).
# --------------------------------------------------------------------------
def cnn_net_forward(x, params, *, tm_max=512, tk_max=2048):
    conv_w, conv_b, fc1_w, fc1_b, fc2_w, fc2_b = params
    B, Cin, H, W = x.shape
    Ho, Wo = H - 2, W - 2              # valid 3x3 conv
    assert Ho % 2 == 0 and Wo % 2 == 0, "2x2/2 maxpool expects even conv output"
    Hp, Wp = Ho // 2, Wo // 2          # 2x2 stride-2 maxpool
    S = Hp * Wp
    F = Cin * 9
    num_classes = fc2_w.shape[0]
    n_rows = B * S
    nc_pad = _round_up(num_classes, LANE)   # fc2 N padded for a lane-dense store

    # ---- im2col (XLA glue) -> (4, B*S, F); rows ordered (pool offset, b, pi, pj),
    # feature order (c, dy, dx); bf16, K left unpadded.
    # TODO(synk): at 224x224, do the conv in-kernel as 9 shifted-window matmuls
    # from an NHWC tile to avoid the 9x im2col HBM blow-up.
    xb = x.astype(jnp.bfloat16)
    cols = [xb[:, :, dy:dy + Ho, dx:dx + Wo] for dy in range(3) for dx in range(3)]
    patches = jnp.stack(cols, axis=2)                 # (B, Cin, 9, Ho, Wo)
    patches = patches.reshape(B, F, Hp, 2, Wp, 2)     # (B, F, pi, u, pj, v)
    patches = patches.transpose(3, 5, 0, 2, 4, 1)     # (u, v, B, pi, pj, F)
    patches = patches.reshape(4, n_rows, F)

    tm = min(tm_max, _round_up(n_rows, 8))            # row tile (multiple of 8)
    n_rows_pad = _round_up(n_rows, tm)
    if n_rows_pad != n_rows:
        patches = jnp.pad(patches, ((0, 0), (0, n_rows_pad - n_rows), (0, 0)))

    w_mat = conv_w.reshape(C_OUT, F).T.astype(jnp.bfloat16)    # (F, 32)
    b_row = conv_b.reshape(1, C_OUT).astype(jnp.float32)

    pooled = pl.pallas_call(
        conv_pool_kernel,
        grid=(n_rows_pad // tm,),
        out_shape=jax.ShapeDtypeStruct((n_rows_pad, C_OUT), jnp.bfloat16),
        in_specs=[
            pl.BlockSpec((4, tm, F), lambda i: (0, i, 0)),
            pl.BlockSpec((F, C_OUT), lambda i: (0, 0)),
            pl.BlockSpec((1, C_OUT), lambda i: (0, 0)),
        ],
        out_specs=pl.BlockSpec((tm, C_OUT), lambda i: (i, 0)),
        compiler_params=pltpu.CompilerParams(
            dimension_semantics=("parallel",)),
    )(patches, w_mat, b_row)

    # Free row-major bitcast: feat[b, s*32 + c] = pooled[b*S + s, c].
    feat = pooled[:n_rows].reshape(B, S * C_OUT)

    # fc1 weight pre-permuted from PyTorch's channel-major x.view(-1, 32*Hp*Wp)
    # feature order (c, pi, pj) to our spatial-major (pi, pj, c) order.
    K = S * C_OUT
    w1p = fc1_w.reshape(FC_HIDDEN, C_OUT, S).transpose(2, 1, 0)    # (S, 32, 128)
    w1p = w1p.reshape(K, FC_HIDDEN).astype(jnp.bfloat16)

    tk = min(tk_max, _round_up(K, LANE))               # K tile (multiple of 128)
    K_pad = _round_up(K, tk)
    if K_pad != K:
        feat = jnp.pad(feat, ((0, 0), (0, K_pad - K)))
        w1p = jnp.pad(w1p, ((0, K_pad - K), (0, 0)))

    b1_row = fc1_b.reshape(1, FC_HIDDEN).astype(jnp.float32)
    w2p = jnp.pad(fc2_w.T, ((0, 0), (0, nc_pad - num_classes))).astype(jnp.bfloat16)
    b2p = jnp.pad(fc2_b, (0, nc_pad - num_classes)).reshape(1, nc_pad).astype(jnp.float32)

    out_pad = pl.pallas_call(
        mlp_kernel,
        grid=(K_pad // tk,),
        out_shape=jax.ShapeDtypeStruct((B, nc_pad), jnp.float32),
        in_specs=[
            pl.BlockSpec((B, tk), lambda k: (0, k)),
            pl.BlockSpec((tk, FC_HIDDEN), lambda k: (k, 0)),
            pl.BlockSpec((1, FC_HIDDEN), lambda k: (0, 0)),
            pl.BlockSpec((FC_HIDDEN, nc_pad), lambda k: (0, 0)),
            pl.BlockSpec((1, nc_pad), lambda k: (0, 0)),
        ],
        out_specs=pl.BlockSpec((B, nc_pad), lambda k: (0, 0)),
        scratch_shapes=[pltpu.VMEM((B, FC_HIDDEN), jnp.float32)],
        compiler_params=pltpu.CompilerParams(
            dimension_semantics=("arbitrary",)),
    )(feat, w1p, b1_row, w2p, b2p)

    return out_pad[:, :num_classes]


# --------------------------------------------------------------------------
# Deterministic synthetic parameters (same shapes as the nn.Module).
# --------------------------------------------------------------------------
def init_params(key, input_channels, num_classes, fc1_in):
    ks = jax.random.split(key, 6)
    conv_w = 0.1 * jax.random.normal(ks[0], (C_OUT, input_channels, 3, 3), jnp.float32)
    conv_b = 0.1 * jax.random.normal(ks[1], (C_OUT,), jnp.float32)
    fc1_w = 0.02 * jax.random.normal(ks[2], (FC_HIDDEN, fc1_in), jnp.float32)
    fc1_b = 0.1 * jax.random.normal(ks[3], (FC_HIDDEN,), jnp.float32)
    fc2_w = 0.1 * jax.random.normal(ks[4], (num_classes, FC_HIDDEN), jnp.float32)
    fc2_b = 0.1 * jax.random.normal(ks[5], (num_classes,), jnp.float32)
    return conv_w, conv_b, fc1_w, fc1_b, fc2_w, fc2_b


# Pure-JAX f32 reference for correctness (same math as the PyTorch forward).
def reference_forward(x, params):
    conv_w, conv_b, fc1_w, fc1_b, fc2_w, fc2_b = params
    y = jax.lax.conv_general_dilated(
        x, conv_w, window_strides=(1, 1), padding="VALID",
        dimension_numbers=("NCHW", "OIHW", "NCHW"))
    y = jnp.maximum(y + conv_b[None, :, None, None], 0.0)
    B, C, Ho, Wo = y.shape
    y = y.reshape(B, C, Ho // 2, 2, Wo // 2, 2).max(axis=(3, 5))
    f = y.reshape(B, -1)
    h = jnp.maximum(f @ fc1_w.T + fc1_b, 0.0)
    return h @ fc2_w.T + fc2_b


if __name__ == "__main__":
    B, Cin, H, W = 2, 4, 18, 18      # small shapes; conv->16x16, pool->8x8
    num_classes = 10
    Hp, Wp = (H - 2) // 2, (W - 2) // 2

    key = jax.random.PRNGKey(0)
    kx, kp = jax.random.split(key)
    x = jax.random.normal(kx, (B, Cin, H, W), jnp.float32)
    params = init_params(kp, Cin, num_classes, C_OUT * Hp * Wp)

    # Small tiles at the toy size so both grids actually take multiple steps
    # (tm=64 -> 2 row tiles, tk=512 -> 4 K tiles); at real sizes use the
    # defaults (tm=512, tk=2048), sized to fit v7x's 64 MiB VMEM.
    fwd = jax.jit(functools.partial(cnn_net_forward, tm_max=64, tk_max=512))
    out = jax.block_until_ready(fwd(x, params))
    ref = jax.block_until_ready(reference_forward(x, params))

    assert out.shape == (B, num_classes)
    # bf16 MXU operands with f32 accumulation -> loosened tolerances.
    np.testing.assert_allclose(np.asarray(out), np.asarray(ref), rtol=2e-2, atol=2e-2)
    print("KERNEL_OK")
</pallas_src>

<mosaic_0001>
module attributes {stable_mosaic.version = 11 : i64} {
  func.func @conv_pool_kernel(%arg0: i32, %arg1: memref<4x64x36xbf16, #tpu.memory_space<vmem>>, %arg2: memref<36x32xbf16, #tpu.memory_space<vmem>>, %arg3: memref<1x32xf32, #tpu.memory_space<vmem>>, %arg4: memref<64x32xbf16, #tpu.memory_space<vmem>>) attributes {dimension_semantics = [#tpu.dimension_semantics<parallel>], iteration_bounds = array<i64: 2>, scalar_prefetch = 0 : i64, scratch_operands = 0 : i64, tpu.core_type = #tpu.core_type<tc>, window_params = [{transform_indices = @transform_0, window_bounds = array<i64: 4, 64, 36>}, {pipeline_mode = #tpu.pipeline_mode<synchronous>, transform_indices = @transform_1, window_bounds = array<i64: 36, 32>}, {pipeline_mode = #tpu.pipeline_mode<synchronous>, transform_indices = @transform_2, window_bounds = array<i64: 1, 32>}, {transform_indices = @transform_3, window_bounds = array<i64: 64, 32>}]} {
    %c0 = arith.constant 0 : index
    %c0_0 = arith.constant 0 : index
    %0 = vector.load %arg2[%c0, %c0_0] : memref<36x32xbf16, #tpu.memory_space<vmem>>, vector<36x32xbf16>
    %c0_1 = arith.constant 0 : index
    %c0_2 = arith.constant 0 : index
    %c0_3 = arith.constant 0 : index
    %1 = vector.load %arg1[%c0_1, %c0_2, %c0_3] : memref<4x64x36xbf16, #tpu.memory_space<vmem>>, vector<1x64x36xbf16>
    %2 = vector.shape_cast %1 : vector<1x64x36xbf16> to vector<64x36xbf16>
    %cst = arith.constant dense<0.000000e+00> : vector<64x32xf32>
    %3 = tpu.matmul %2, %0, %cst {dimension_numbers = #tpu.dot_dimension_numbers<[1], [0], [0], [1], [0, 0, 1, 1], [], []>} : vector<64x36xbf16>, vector<36x32xbf16>, vector<64x32xf32> -> vector<64x32xf32>
    %c1 = arith.constant 1 : index
    %c0_4 = arith.constant 0 : index
    %c0_5 = arith.constant 0 : index
    %4 = vector.load %arg1[%c1, %c0_4, %c0_5] : memref<4x64x36xbf16, #tpu.memory_space<vmem>>, vector<1x64x36xbf16>
    %5 = vector.shape_cast %4 : vector<1x64x36xbf16> to vector<64x36xbf16>
    %cst_6 = arith.constant dense<0.000000e+00> : vector<64x32xf32>
    %6 = tpu.matmul %5, %0, %cst_6 {dimension_numbers = #tpu.dot_dimension_numbers<[1], [0], [0], [1], [0, 0, 1, 1], [], []>} : vector<64x36xbf16>, vector<36x32xbf16>, vector<64x32xf32> -> vector<64x32xf32>
    %7 = arith.maximumf %3, %6 : vector<64x32xf32>
    %c2 = arith.constant 2 : index
    %c0_7 = arith.constant 0 : index
    %c0_8 = arith.constant 0 : index
    %8 = vector.load %arg1[%c2, %c0_7, %c0_8] : memref<4x64x36xbf16, #tpu.memory_space<vmem>>, vector<1x64x36xbf16>
    %9 = vector.shape_cast %8 : vector<1x64x36xbf16> to vector<64x36xbf16>
    %cst_9 = arith.constant dense<0.000000e+00> : vector<64x32xf32>
    %10 = tpu.matmul %9, %0, %cst_9 {dimension_numbers = #tpu.dot_dimension_numbers<[1], [0], [0], [1], [0, 0, 1, 1], [], []>} : vector<64x36xbf16>, vector<36x32xbf16>, vector<64x32xf32> -> vector<64x32xf32>
    %11 = arith.maximumf %7, %10 : vector<64x32xf32>
    %c3 = arith.constant 3 : index
    %c0_10 = arith.constant 0 : index
    %c0_11 = arith.constant 0 : index
    %12 = vector.load %arg1[%c3, %c0_10, %c0_11] : memref<4x64x36xbf16, #tpu.memory_space<vmem>>, vector<1x64x36xbf16>
    %13 = vector.shape_cast %12 : vector<1x64x36xbf16> to vector<64x36xbf16>
    %cst_12 = arith.constant dense<0.000000e+00> : vector<64x32xf32>
    %14 = tpu.matmul %13, %0, %cst_12 {dimension_numbers = #tpu.dot_dimension_numbers<[1], [0], [0], [1], [0, 0, 1, 1], [], []>} : vector<64x36xbf16>, vector<36x32xbf16>, vector<64x32xf32> -> vector<64x32xf32>
    %15 = arith.maximumf %11, %14 : vector<64x32xf32>
    %c0_13 = arith.constant 0 : index
    %c0_14 = arith.constant 0 : index
    %16 = vector.load %arg3[%c0_13, %c0_14] : memref<1x32xf32, #tpu.memory_space<vmem>>, vector<1x32xf32>
    %17 = vector.broadcast %16 : vector<1x32xf32> to vector<64x32xf32>
    %18 = arith.addf %15, %17 : vector<64x32xf32>
    %cst_15 = arith.constant 0.000000e+00 : f32
    %19 = vector.broadcast %cst_15 : f32 to vector<64x32xf32>
    %20 = arith.maximumf %18, %19 : vector<64x32xf32>
    %21 = arith.truncf %20 : vector<64x32xf32> to vector<64x32xbf16>
    %c0_16 = arith.constant 0 : index
    %c0_17 = arith.constant 0 : index
    %22 = vector.load %arg4[%c0_16, %c0_17] : memref<64x32xbf16, #tpu.memory_space<vmem>>, vector<64x32xbf16>
    tpu.vector_store %arg4[%c0_16, %c0_17], %21 {strides = array<i32>} : memref<64x32xbf16, #tpu.memory_space<vmem>>, vector<64x32xbf16>,
    return
  }
  func.func @transform_0(%arg0: i32) -> (i32, i32, i32) {
    %c0_i32 = arith.constant 0 : i32
    %c0_i32_0 = arith.constant 0 : i32
    %c0_i32_1 = arith.constant 0 : i32
    return %c0_i32, %arg0, %c0_i32_0 : i32, i32, i32
  }
  func.func @transform_1(%arg0: i32) -> (i32, i32) {
    %c0_i32 = arith.constant 0 : i32
    %c0_i32_0 = arith.constant 0 : i32
    %c0_i32_1 = arith.constant 0 : i32
    return %c0_i32, %c0_i32_0 : i32, i32
  }
  func.func @transform_2(%arg0: i32) -> (i32, i32) {
    %c0_i32 = arith.constant 0 : i32
    %c0_i32_0 = arith.constant 0 : i32
    %c0_i32_1 = arith.constant 0 : i32
    return %c0_i32, %c0_i32_0 : i32, i32
  }
  func.func @transform_3(%arg0: i32) -> (i32, i32) {
    %c0_i32 = arith.constant 0 : i32
    %c0_i32_0 = arith.constant 0 : i32
    return %arg0, %c0_i32 : i32, i32
  }
}

module attributes {stable_mosaic.version = 11 : i64} {
  func.func @mlp_kernel(%arg0: i32, %arg1: memref<2x512xbf16, #tpu.memory_space<vmem>>, %arg2: memref<512x128xbf16, #tpu.memory_space<vmem>>, %arg3: memref<1x128xf32, #tpu.memory_space<vmem>>, %arg4: memref<128x128xbf16, #tpu.memory_space<vmem>>, %arg5: memref<1x128xf32, #tpu.memory_space<vmem>>, %arg6: memref<2x128xf32, #tpu.memory_space<vmem>>, %arg7: memref<2x128xf32, #tpu.memory_space<vmem>>) attributes {dimension_semantics = [#tpu.dimension_semantics<arbitrary>], iteration_bounds = array<i64: 4>, scalar_prefetch = 0 : i64, scratch_operands = 1 : i64, tpu.core_type = #tpu.core_type<tc>, window_params = [{transform_indices = @transform_0, window_bounds = array<i64: 2, 512>}, {transform_indices = @transform_1, window_bounds = array<i64: 512, 128>}, {pipeline_mode = #tpu.pipeline_mode<synchronous>, transform_indices = @transform_2, window_bounds = array<i64: 1, 128>}, {pipeline_mode = #tpu.pipeline_mode<synchronous>, transform_indices = @transform_3, window_bounds = array<i64: 128, 128>}, {pipeline_mode = #tpu.pipeline_mode<synchronous>, transform_indices = @transform_4, window_bounds = array<i64: 1, 128>}, {pipeline_mode = #tpu.pipeline_mode<synchronous>, transform_indices = @transform_5, window_bounds = array<i64: 2, 128>}]} {
    %c0_i32 = arith.constant 0 : i32
    %0 = arith.cmpi eq, %arg0, %c0_i32 : i32
    %1 = arith.extui %0 : i1 to i32
    %c0_i32_0 = arith.constant 0 : i32
    %2 = arith.cmpi ne, %1, %c0_i32_0 : i32
    scf.if %2 {
      %cst_9 = arith.constant 0.000000e+00 : f32
      %12 = vector.broadcast %cst_9 : f32 to vector<2x128xf32>
      %c0_10 = arith.constant 0 : index
      %c0_11 = arith.constant 0 : index
      %13 = vector.load %arg7[%c0_10, %c0_11] : memref<2x128xf32, #tpu.memory_space<vmem>>, vector<2x128xf32>
      tpu.vector_store %arg7[%c0_10, %c0_11], %12 {strides = array<i32>} : memref<2x128xf32, #tpu.memory_space<vmem>>, vector<2x128xf32>,
    } else {
    }
    %c0 = arith.constant 0 : index
    %c0_1 = arith.constant 0 : index
    %3 = vector.load %arg7[%c0, %c0_1] : memref<2x128xf32, #tpu.memory_space<vmem>>, vector<2x128xf32>
    %c0_2 = arith.constant 0 : index
    %c0_3 = arith.constant 0 : index
    %4 = vector.load %arg1[%c0_2, %c0_3] : memref<2x512xbf16, #tpu.memory_space<vmem>>, vector<2x512xbf16>
    %c0_4 = arith.constant 0 : index
    %c0_5 = arith.constant 0 : index
    %5 = vector.load %arg2[%c0_4, %c0_5] : memref<512x128xbf16, #tpu.memory_space<vmem>>, vector<512x128xbf16>
    %cst = arith.constant dense<0.000000e+00> : vector<2x128xf32>
    %6 = tpu.matmul %4, %5, %cst {dimension_numbers = #tpu.dot_dimension_numbers<[1], [0], [0], [1], [0, 0, 1, 1], [], []>} : vector<2x512xbf16>, vector<512x128xbf16>, vector<2x128xf32> -> vector<2x128xf32>
    %7 = arith.addf %3, %6 : vector<2x128xf32>
    %c0_6 = arith.constant 0 : index
    %c0_7 = arith.constant 0 : index
    %8 = vector.load %arg7[%c0_6, %c0_7] : memref<2x128xf32, #tpu.memory_space<vmem>>, vector<2x128xf32>
    tpu.vector_store %arg7[%c0_6, %c0_7], %7 {strides = array<i32>} : memref<2x128xf32, #tpu.memory_space<vmem>>, vector<2x128xf32>,
    %c3_i32 = arith.constant 3 : i32
    %9 = arith.cmpi eq, %arg0, %c3_i32 : i32
    %10 = arith.extui %9 : i1 to i32
    %c0_i32_8 = arith.constant 0 : i32
    %11 = arith.cmpi ne, %10, %c0_i32_8 : i32
    scf.if %11 {
      %c0_9 = arith.constant 0 : index
      %c0_10 = arith.constant 0 : index
      %12 = vector.load %arg7[%c0_9, %c0_10] : memref<2x128xf32, #tpu.memory_space<vmem>>, vector<2x128xf32>
      %c0_11 = arith.constant 0 : index
      %c0_12 = arith.constant 0 : index
      %13 = vector.load %arg3[%c0_11, %c0_12] : memref<1x128xf32, #tpu.memory_space<vmem>>, vector<1x128xf32>
      %14 = vector.broadcast %13 : vector<1x128xf32> to vector<2x128xf32>
      %15 = arith.addf %12, %14 : vector<2x128xf32>
      %cst_13 = arith.constant 0.000000e+00 : f32
      %16 = vector.broadcast %cst_13 : f32 to vector<2x128xf32>
      %17 = arith.maximumf %15, %16 : vector<2x128xf32>
      %18 = arith.truncf %17 : vector<2x128xf32> to vector<2x128xbf16>
      %c0_14 = arith.constant 0 : index
      %c0_15 = arith.constant 0 : index
      %19 = vector.load %arg4[%c0_14, %c0_15] : memref<128x128xbf16, #tpu.memory_space<vmem>>, vector<128x128xbf16>
      %cst_16 = arith.constant dense<0.000000e+00> : vector<2x128xf32>
      %20 = tpu.matmul %18, %19, %cst_16 {dimension_numbers = #tpu.dot_dimension_numbers<[1], [0], [0], [1], [0, 0, 1, 1], [], []>} : vector<2x128xbf16>, vector<128x128xbf16>, vector<2x128xf32> -> vector<2x128xf32>
      %c0_17 = arith.constant 0 : index
      %c0_18 = arith.constant 0 : index
      %21 = vector.load %arg5[%c0_17, %c0_18] : memref<1x128xf32, #tpu.memory_space<vmem>>, vector<1x128xf32>
      %22 = vector.broadcast %21 : vector<1x128xf32> to vector<2x128xf32>
      %23 = arith.addf %20, %22 : vector<2x128xf32>
      %c0_19 = arith.constant 0 : index
      %c0_20 = arith.constant 0 : index
      %24 = vector.load %arg6[%c0_19, %c0_20] : memref<2x128xf32, #tpu.memory_space<vmem>>, vector<2x128xf32>
      tpu.vector_store %arg6[%c0_19, %c0_20], %23 {strides = array<i32>} : memref<2x128xf32, #tpu.memory_space<vmem>>, vector<2x128xf32>,
    } else {
    }
    return
  }
  func.func @transform_0(%arg0: i32) -> (i32, i32) {
    %c0_i32 = arith.constant 0 : i32
    %c0_i32_0 = arith.constant 0 : i32
    return %c0_i32, %arg0 : i32, i32
  }
  func.func @transform_1(%arg0: i32) -> (i32, i32) {
    %c0_i32 = arith.constant 0 : i32
    %c0_i32_0 = arith.constant 0 : i32
    return %arg0, %c0_i32 : i32, i32
  }
  func.func @transform_2(%arg0: i32) -> (i32, i32) {
    %c0_i32 = arith.constant 0 : i32
    %c0_i32_0 = arith.constant 0 : i32
    %c0_i32_1 = arith.constant 0 : i32
    return %c0_i32, %c0_i32_0 : i32, i32
  }
  func.func @transform_3(%arg0: i32) -> (i32, i32) {
    %c0_i32 = arith.constant 0 : i32
    %c0_i32_0 = arith.constant 0 : i32
    %c0_i32_1 = arith.constant 0 : i32
    return %c0_i32, %c0_i32_0 : i32, i32
  }
  func.func @transform_4(%arg0: i32) -> (i32, i32) {
    %c0_i32 = arith.constant 0 : i32
    %c0_i32_0 = arith.constant 0 : i32
    %c0_i32_1 = arith.constant 0 : i32
    return %c0_i32, %c0_i32_0 : i32, i32
  }
  func.func @transform_5(%arg0: i32) -> (i32, i32) {
    %c0_i32 = arith.constant 0 : i32
    %c0_i32_0 = arith.constant 0 : i32
    %c0_i32_1 = arith.constant 0 : i32
    return %c0_i32, %c0_i32_0 : i32, i32
  }
}

</mosaic_0001>

<bundles_post_ra>
// kernel: cnn_net_forward.2
= control target key start
LH: loop header
LB: loop body
LE: loop exit
PB: predicated region body
PF: predicated region fallthrough
CT: control target
= control target key end

     0   :  { %s1205_s12 = smov 0   ;;  %s1207_s13 = smov 0   ;;  %s1354_s0 = inlined_call_operand.vmem [shape: bf16[4,128,36], index: 0, kind: input, shape index: {}]   ;;  %s1355_s1 = inlined_call_operand.vmem [shape: bf16[36,32], index: 1, kind: input, shape index: {}]   ;;  %s1356_s2 = inlined_call_operand.vmem [shape: f32[1,32], index: 2, kind: input, shape index: {}]   ;;  %s1357_s3 = inlined_call_operand.vmem [shape: bf16[128,32], index: 3, kind: output, shape index: {}]  }
   0x1   :  { %s1209_s14 = smov 0  }
   0x2 LB: > { %s940_s15 = sadd.s32 4294967295, %s1183_s14   ;;  %s1222_s16 = sadd.s32 1, %s1183_s14   ;;  %s1183_s14 = sphi %s1209_s14, %s1360_s14   ;;  %s1179_s13 = sphi %s1207_s13, %s1359_s13   ;;  %s1175_s12 = sphi %s1205_s12, %s1358_s12  }
   0x3   : > { %s17_s17 = ssub.s32 %s1183_s14, %s1222_s16  ;;  %s20_s18 = sadd.s32 1, %s1179_s13 }
   0x4   : > { %p18_p0 = scmp.eq.s32.totalorder %s17_s17, 0  ;;  %p27_p1 = scmp.ne.s32.totalorder %s1179_s13, %s1175_s12 }
   0x5   : > { %p28_p2 = scmp.eq.s32.totalorder %s1183_s14, 0  ;;  %p943_p4 = scmp.ge.s32.totalorder %s1183_s14, 2 }
   0x6   : > { %s1231_s19 = scalar_select %p18_p0, %s1179_s13, %s20_s18  }
   0x7   : > { %p29_p3 = por %p28_p2, %p27_p1  ;;  %127 = sbr.rel (%p943_p4) target bundleno = 24 (0x18), region = 24 }
   0xc   : > { %130 = sbr.rel (!%p29_p3) target bundleno = 24 (0x18), region = 28  ;;  %s132_s20 = sand.u32 (%p29_p3), 1, %s1179_s13  }
   0xd   : > { %s1021_s21 = sshll.u32 (%p29_p3), %s1183_s14, 5  ;;  %s944_s22 = sshll.u32 (%p29_p3), %s132_s20, 7 }
   0xe   : > { %s1239_s25 = scalar_lea.vmem (%p29_p3), %s1354_s0, %s1021_s21  ;;  %s134_s26 = scalar_lea.vmem (%p29_p3), [#allocation2], %s944_s22 }
   0xf   : > { %v154_v0 = vld [vmem:[%s1239_s25] sm:$0xff] (%p29_p3)   ;;  %v158_v1 = vld [vmem:[%s1239_s25 + $0x8] sm:$0xff] (%p29_p3)   ;;  %v162_v2 = vld [vmem:[%s1239_s25 + $0x10] sm:$0xff] (%p29_p3)  }
  0x10   : > { %155 = vst [vmem:[%s134_s26] sm:$0xff] (%p29_p3), %v154_v0   ;;  %159 = vst [vmem:[%s134_s26 + $0x8] sm:$0xff] (%p29_p3), %v158_v1   ;;  %v166_v3 = vld [vmem:[%s1239_s25 + $0x18] sm:$0xff] (%p29_p3)   ;;  %v170_v4 = vld [vmem:[%s1239_s25 + $0x40] sm:$0xff] (%p29_p3)  }
  0x11   : > { %163 = vst [vmem:[%s134_s26 + $0x10] sm:$0xff] %v162_v2   ;;  %v174_v5 = vld [vmem:[%s1239_s25 + $0x48] sm:$0xff]   ;;  %167 = vst [vmem:[%s134_s26 + $0x18] sm:$0xff] %v166_v3   ;;  %v178_v6 = vld [vmem:[%s1239_s25 + $0x50] sm:$0xff]  }
  0x12   : > { %171 = vst [vmem:[%s134_s26 + $0x20] sm:$0xff] %v170_v4   ;;  %175 = vst [vmem:[%s134_s26 + $0x28] sm:$0xff] %v174_v5   ;;  %v182_v7 = vld [vmem:[%s1239_s25 + $0x58] sm:$0xff]   ;;  %v186_v8 = vld [vmem:[%s1239_s25 + $0x80] sm:$0xff]  }
  0x13   : > { %179 = vst [vmem:[%s134_s26 + $0x30] sm:$0xff] %v178_v6   ;;  %183 = vst [vmem:[%s134_s26 + $0x38] sm:$0xff] %v182_v7   ;;  %v190_v9 = vld [vmem:[%s1239_s25 + $0x88] sm:$0xff]   ;;  %v194_v10 = vld [vmem:[%s1239_s25 + $0x90] sm:$0xff]  }
  0x14   : > { %187 = vst [vmem:[%s134_s26 + $0x40] sm:$0xff] %v186_v8   ;;  %v198_v11 = vld [vmem:[%s1239_s25 + $0x98] sm:$0xff]   ;;  %191 = vst [vmem:[%s134_s26 + $0x48] sm:$0xff] %v190_v9   ;;  %v202_v12 = vld [vmem:[%s1239_s25 + $0xc0] sm:$0xff]  }
  0x15   : > { %195 = vst [vmem:[%s134_s26 + $0x50] sm:$0xff] %v194_v10   ;;  %199 = vst [vmem:[%s134_s26 + $0x58] sm:$0xff] %v198_v11   ;;  %v206_v13 = vld [vmem:[%s1239_s25 + $0xc8] sm:$0xff]   ;;  %v210_v14 = vld [vmem:[%s1239_s25 + $0xd0] sm:$0xff]  }
  0x16   : > { %203 = vst [vmem:[%s134_s26 + $0x60] sm:$0xff] %v202_v12   ;;  %207 = vst [vmem:[%s134_s26 + $0x68] sm:$0xff] %v206_v13   ;;  %v214_v15 = vld [vmem:[%s1239_s25 + $0xd8] sm:$0xff]  }
  0x17   : > { %211 = vst [vmem:[%s134_s26 + $0x70] sm:$0xff] %v210_v14   ;;  %215 = vst [vmem:[%s134_s26 + $0x78] sm:$0xff] %v214_v15  }
  0x18 PF: > { %p947_p5 = scmp.ge.s32.totalorder %s1183_s14, 1  ;;  %p304_p6 = scmp.lt.s32.totalorder %s1183_s14, 3 }
  0x1a   : > { %p305_p7 = pnand %p947_p5, %p304_p6 }
  0x1b   : > { %s311_s4 = sand.u32 (!%p305_p7), 1, %s1175_s12   ;;  %s949_s9 = sshll.u32 (!%p305_p7), %s940_s15, 3 }
  0x1c   : > { %308 = sbr.rel (%p305_p7) target bundleno = 280 (0x118), region = 69  ;;  %s948_s5 = sshll.u32 (!%p305_p7), %s311_s4, 7 }
  0x1d   : > { %s1272_s8 = scalar_lea.vmem (!%p305_p7), [#allocation2], %s948_s5  ;;  %p336_p8 = scmp.lt.s32.totalorder (!%p305_p7), %s949_s9, 15 }
  0x21   : > { %v1142_v16 = vld [vmem:[%s1355_s1 + $0x10] ss:$0 sps:$4 sm:$0x33]   ;;  %vm403_vm0 = vcmask 1041408   ;;  %v1143_v17 = vld [vmem:[%s1355_s1 + $0x8] sm:$0xff]   ;;  %v1144_v19 = vld [vmem:[%s1355_s1] sm:$0xff]  }
  0x22   : > { %1114 = vmatprep.subr.msk.bf16.mxu0 %vm403_vm0, %v1142_v16  ;;  %1115 = vmatprep.subr.msk.bf16.mxu1 %vm403_vm0, %v1142_v16  ;;  %v405_v18 = vsel %vm403_vm0, %v1142_v16, 0  ;;  %v1145_v20 = vld [vmem:[%s1272_s8] sm:$0xff]   ;;  %vm390_vm1 = vcmask 293888   ;;  %v1147_v22 = vld [vmem:[%s1272_s8 + $0x8] sm:$0xff]   ;;  %v1149_v24 = vld [vmem:[%s1272_s8 + $0x10] sm:$0xff]   ;;  %s1362_s9 = smov (!%p336_p8, %s949_s9), 15 }
  0x23   : > { %1059 = vmatpush3.bf16.msra.mxu0 %v405_v18  ;;  %1073 = vmatpush3.bf16.msra.mxu1 %v405_v18  ;;  %v1146_v21 = vld [vmem:[%s1272_s8 + $0x20] sm:$0xff]   ;;  %v1148_v23 = vld [vmem:[%s1272_s8 + $0x28] sm:$0xff]   ;;  %v1150_v25 = vld [vmem:[%s1272_s8 + $0x30] sm:$0xff]   ;;  %s950_s12 = sshll.u32 %s1362_s9, 2  ;;  %vm869_vm2 = vcmask 257024  }
  0x24   : > { %1060 = vmatprep.subr.bf16.mxu0 %v1143_v17  ;;  %1074 = vmatprep.subr.bf16.mxu1 %v1143_v17  ;;  %v1151_v26 = vld [vmem:[%s1272_s8 + $0x18] sm:$0xff]   ;;  %v1153_v28 = vld [vmem:[%s1272_s8 + $0x40] sm:$0xff]   ;;  %v1155_v30 = vld [vmem:[%s1272_s8 + $0x48] sm:$0xff]   ;;  %s1320_s17 = scalar_lea.vmem %s1357_s3, %s950_s12 }
  0x25   : > { %1064 = vmatprep.mubr.msk.bf16.mxu0 %vm390_vm1, %v1145_v20  ;;  %1078 = vmatprep.mubr.msk.bf16.mxu1 %vm390_vm1, %v1146_v21  ;;  %v1152_v27 = vld [vmem:[%s1272_s8 + $0x38] sm:$0xff]   ;;  %v1154_v29 = vld [vmem:[%s1272_s8 + $0x60] sm:$0xff]   ;;  %v1156_v31 = vld [vmem:[%s1272_s8 + $0x68] sm:$0xff]  }
  0x26   : > { %v1157_v32 = vld [vmem:[%s1272_s8 + $0x50] sm:$0xff]   ;;  %v1159_v34 = vld [vmem:[%s1272_s8 + $0x58] sm:$0xff]   ;;  %v1313_v57 = vld [vmem:[%s1356_s2] ss:$0 sm:$0xff] }
  0x27   : > { %1061 = vmatpush3.bf16.msra.mxu0 %v1143_v17  ;;  %1075 = vmatpush3.bf16.msra.mxu1 %v1143_v17  ;;  %v1158_v33 = vld [vmem:[%s1272_s8 + $0x70] sm:$0xff]   ;;  %v1160_v35 = vld [vmem:[%s1272_s8 + $0x78] sm:$0xff]  }
  0x28   : > { %1062 = vmatprep.subr.bf16.mxu0 %v1144_v19  ;;  %1076 = vmatprep.subr.bf16.mxu1 %v1144_v19 }
  0x2b   : > { %1063 = vmatpush3.bf16.msra.mxu0 %v1144_v19  ;;  %1077 = vmatpush3.bf16.msra.mxu1 %v1144_v19 }
  0x2c   : > { %1116 = vmatprep.subr.msk.bf16.mxu0 %vm403_vm0, %v1142_v16  ;;  %1117 = vmatprep.subr.msk.bf16.mxu1 %vm403_vm0, %v1142_v16 }
  0x2e   : > { %1065 = vmatmul.mubr.msk.bf16.vlgmr.msra.gmra.mxu0 %vm390_vm1, %v1147_v22  ;;  %1079 = vmatmul.mubr.msk.bf16.vlgmr.msra.gmra.mxu1 %vm390_vm1, %v1148_v23 }
  0x2f   : > { %1087 = vmatpush3.bf16.msra.mxu0 %v405_v18  ;;  %1101 = vmatpush3.bf16.msra.mxu1 %v405_v18 }
  0x30   : > { %1088 = vmatprep.subr.bf16.mxu0 %v1143_v17  ;;  %1068 = vmatprep.mubr.msk.bf16.mxu0 %vm390_vm1, %v1149_v24 }
  0x31   : > { %1082 = vmatprep.mubr.msk.bf16.mxu1 %vm390_vm1, %v1150_v25  ;;  %1102 = vmatprep.subr.bf16.mxu1 %v1143_v17 }
  0x33   : > { %1089 = vmatpush3.bf16.msra.mxu0 %v1143_v17  ;;  %1103 = vmatpush3.bf16.msra.mxu1 %v1143_v17 }
  0x34   : > { %1090 = vmatprep.subr.bf16.mxu0 %v1144_v19  ;;  %1104 = vmatprep.subr.bf16.mxu1 %v1144_v19 }
  0x36   : > { %1069 = vmatmul.mubr.msk.bf16.gmra.mxu0 %vm390_vm1, %v1151_v26  ;;  %1083 = vmatmul.mubr.msk.bf16.gmra.mxu1 %vm390_vm1, %v1152_v27 }
  0x37   : > { %1091 = vmatpush3.bf16.msra.mxu0 %v1144_v19  ;;  %1105 = vmatpush3.bf16.msra.mxu1 %v1144_v19 }
  0x38   : > { %1092 = vmatprep.mubr.msk.bf16.mxu0 %vm390_vm1, %v1153_v28  ;;  %1106 = vmatprep.mubr.msk.bf16.mxu1 %vm390_vm1, %v1154_v29 }
  0x3e   : > { %1093 = vmatmul.mubr.msk.bf16.vlgmr.msra.gmra.mxu0 %vm390_vm1, %v1155_v30  ;;  %1107 = vmatmul.mubr.msk.bf16.vlgmr.msra.gmra.mxu1 %vm390_vm1, %v1156_v31 }
  0x3f   : > { %1096 = vmatprep.mubr.msk.bf16.mxu0 %vm390_vm1, %v1157_v32  ;;  %1110 = vmatprep.mubr.msk.bf16.mxu1 %vm390_vm1, %v1158_v33 }
  0x46   : > { %1097 = vmatmul.mubr.msk.bf16.gmra.mxu0 %vm390_vm1, %v1159_v34  ;;  %1111 = vmatmul.mubr.msk.bf16.gmra.mxu1 %vm390_vm1, %v1160_v35 }
  0xee   : > { %v1066_v36 = vpop.f32.mrf.mxu0  ;;  %v1080_v37 = vpop.f32.mrf.mxu1 }
  0xef   : > { %v580_v52 = vmax.f32 %v1066_v36, %v1080_v37 }
  0xf0   : > { %v441_v38 = vpop.f32.mrf.mxu0  ;;  %v547_v39 = vpop.f32.mrf.mxu1 }
  0xf1   : > { %v578_v55 = vmax.f32 %v441_v38, %v547_v39 }
  0xf2   : > { %v1067_v40 = vpop.f32.mrf.mxu0  ;;  %v1081_v41 = vpop.f32.mrf.mxu1 }
  0xf3   : > { %v581_v60 = vmax.f32 %v1067_v40, %v1081_v41 }
  0xf4   : > { %v444_v42 = vpop.f32.mrf.mxu0  ;;  %v550_v43 = vpop.f32.mrf.mxu1 }
  0xf5   : > { %v579_v1 = vmax.f32 %v444_v42, %v550_v43 }
  0xf6   : > { %v1070_v44 = vpop.f32.mrf.mxu0  ;;  %v1084_v45 = vpop.f32.mrf.mxu1 }
  0xf7   : > { %v584_v11 = vmax.f32 %v1070_v44, %v1084_v45 }
  0xf8   : > { %v457_v46 = vpop.f32.mrf.mxu0  ;;  %v563_v47 = vpop.f32.mrf.mxu1 }
  0xf9   : > { %v582_v12 = vmax.f32 %v457_v46, %v563_v47 }
  0xfa   : > { %v1071_v48 = vpop.f32.mrf.mxu0  ;;  %v1085_v49 = vpop.f32.mrf.mxu1 }
  0xfb   : > { %v585_v19 = vmax.f32 %v1071_v48, %v1085_v49 }
  0xfc   : > { %v460_v50 = vpop.f32.mrf.mxu0  ;;  %v566_v51 = vpop.f32.mrf.mxu1 }
  0xfd   : > { %v583_v27 = vmax.f32 %v460_v50, %v566_v51 }
  0xfe   : > { %v1094_v53 = vpop.f32.mrf.mxu0  ;;  %v1108_v54 = vpop.f32.mrf.mxu1 }
  0xff   : > { %v694_v56 = vmax.f32 %v580_v52, %v1094_v53 }
 0x100   : > { %v661_v58 = vpop.f32.mrf.mxu0  ;;  %v775_v59 = vpop.f32.mrf.mxu1 }
 0x101   : > { %v808_v61 = vmax.f32 %v694_v56, %v1108_v54  ;;  %v692_v62 = vmax.f32 %v578_v55, %v661_v58 }
 0x102   : > { %v1095_v63 = vpop.f32.mrf.mxu0  ;;  %v1109_v0 = vpop.f32.mrf.mxu1 }
 0x103   : > { %v823_v2 = vadd.f32 %v1313_v57, %v808_v61  ;;  %v806_v3 = vmax.f32 %v692_v62, %v775_v59  ;;  %v695_v4 = vmax.f32 %v581_v60, %v1095_v63 }
 0x104   : > { %v664_v5 = vpop.f32.mrf.mxu0  ;;  %v778_v6 = vpop.f32.mrf.mxu1 }
 0x105   : > { %v831_v7 = vmax.f32 %v823_v2, 0.0  ;;  %v821_v8 = vadd.f32 %v1313_v57, %v806_v3  ;;  %v809_v9 = vmax.f32 %v695_v4, %v1109_v0  ;;  %v693_v10 = vmax.f32 %v579_v1, %v664_v5 }
 0x106   : > { %v1098_v13 = vpop.f32.mrf.mxu0  ;;  %v1112_v14 = vpop.f32.mrf.mxu1 }
 0x107   : > { %v1024_v15 = vpack.c.bf16 %v831_v7, %v831_v7  ;;  %v829_v16 = vmax.f32 %v821_v8, 0.0  ;;  %v824_v17 = vadd.f32 %v1313_v57, %v809_v9  ;;  %v807_v18 = vmax.f32 %v693_v10, %v778_v6 }
 0x108   : > { %v698_v20 = vmax.f32 %v584_v11, %v1098_v13  ;;  %v677_v21 = vpop.f32.mrf.mxu0  ;;  %v791_v22 = vpop.f32.mrf.mxu1 }
 0x109   : > { %872 = vst.msk [vmem:[%s1320_s17 + $0x8] sm:$0xf] %vm869_vm2, %v1024_v15  ;;  %v1022_v23 = vpack.c.bf16 %v829_v16, %v829_v16  ;;  %v832_v24 = vmax.f32 %v824_v17, 0.0  ;;  %v822_v25 = vadd.f32 %v1313_v57, %v807_v18  ;;  %v696_v26 = vmax.f32 %v582_v12, %v677_v21 }
 0x10a   : > { %v812_v28 = vmax.f32 %v698_v20, %v1112_v14  ;;  %v1099_v29 = vpop.f32.mrf.mxu0  ;;  %v1113_v30 = vpop.f32.mrf.mxu1 }
 0x10b   : > { %870 = vst.msk [vmem:[%s1320_s17] sm:$0xf] %vm869_vm2, %v1022_v23  ;;  %v1025_v31 = vpack.c.bf16 %v832_v24, %v832_v24  ;;  %v830_v32 = vmax.f32 %v822_v25, 0.0  ;;  %v810_v33 = vmax.f32 %v696_v26, %v791_v22  ;;  %v699_v34 = vmax.f32 %v585_v19, %v1099_v29 }
 0x10c   : > { %v827_v35 = vadd.f32 %v1313_v57, %v812_v28  ;;  %v680_v36 = vpop.f32.mrf.mxu0  ;;  %v794_v42 = vpop.f32.mrf.mxu1 }
 0x10d   : > { %873 = vst.msk [vmem:[%s1320_s17 + $0xc] sm:$0xf] %vm869_vm2, %v1025_v31  ;;  %v1023_v37 = vpack.c.bf16 %v830_v32, %v830_v32  ;;  %v825_v38 = vadd.f32 %v1313_v57, %v810_v33  ;;  %v813_v39 = vmax.f32 %v699_v34, %v1113_v30  ;;  %v697_v40 = vmax.f32 %v583_v27, %v680_v36 }
 0x10e   : > { %v835_v41 = vmax.f32 %v827_v35, 0.0 }
 0x10f   : > { %871 = vst.msk [vmem:[%s1320_s17 + $0x4] sm:$0xf] %vm869_vm2, %v1023_v37  ;;  %v833_v43 = vmax.f32 %v825_v38, 0.0  ;;  %v828_v44 = vadd.f32 %v1313_v57, %v813_v39  ;;  %v811_v45 = vmax.f32 %v697_v40, %v794_v42 }
 0x110   : > { %v1028_v46 = vpack.c.bf16 %v835_v41, %v835_v41 }
 0x111   : > { %v1026_v47 = vpack.c.bf16 %v833_v43, %v833_v43  ;;  %v836_v48 = vmax.f32 %v828_v44, 0.0  ;;  %v826_v49 = vadd.f32 %v1313_v57, %v811_v45 }
 0x112   : > { %876 = vst.msk [vmem:[%s1320_s17 + $0x18] sm:$0xf] %vm869_vm2, %v1028_v46 }
 0x113   : > { %874 = vst.msk [vmem:[%s1320_s17 + $0x10] sm:$0xf] %vm869_vm2, %v1026_v47  ;;  %v1029_v50 = vpack.c.bf16 %v836_v48, %v836_v48  ;;  %v834_v51 = vmax.f32 %v826_v49, 0.0 }
 0x115   : > { %877 = vst.msk [vmem:[%s1320_s17 + $0x1c] sm:$0xf] %vm869_vm2, %v1029_v50  ;;  %v1027_v52 = vpack.c.bf16 %v834_v51, %v834_v51 }
 0x117   : > { %875 = vst.msk [vmem:[%s1320_s17 + $0x14] sm:$0xf] %vm869_vm2, %v1027_v52 }
 0x118 PF: > { %p10_p9 = scmp.ge.s32.totalorder %s1222_s16, 4   ;;  %s1358_s12 = smov %s1179_s13 }
 0x119   : > { %s1359_s13 = smov %s1231_s19  ;;  %s1360_s14 = smov %s1222_s16 }
 0x11a   :  { %12 = sbr.rel (!%p10_p9) target bundleno = 2 (0x2), region = 111 }

// kernel: cnn_net_forward.3
= control target key start
LH: loop header
LB: loop body
LE: loop exit
PB: predicated region body
PF: predicated region fallthrough
CT: control target
= control target key end

     0   :  { %10 = vsyncpa [#allocation4], 0  ;;  %s1048_s18 = smov 0   ;;  %s1155_s0 = inlined_call_operand.vmem [shape: bf16[2,2048], index: 0, kind: input, shape index: {}]   ;;  %s1156_s1 = inlined_call_operand.vmem [shape: bf16[2048,128], index: 1, kind: input, shape index: {}]   ;;  %s1157_s2 = inlined_call_operand.vmem [shape: f32[1,128], index: 2, kind: input, shape index: {}]   ;;  %s1158_s3 = inlined_call_operand.vmem [shape: bf16[128,128], index: 3, kind: input, shape index: {}]   ;;  %s1159_s4 = inlined_call_operand.vmem [shape: f32[1,128], index: 4, kind: input, shape index: {}]   ;;  %s1160_s5 = inlined_call_operand.hbm [shape: f32[2,128], index: 5, kind: output, shape index: {}]  }
   0x1 LB: > { %s1054_s19 = sadd.s32 4294967295, %s1011_s18   ;;  %p792_p0 = scmp.ge.s32.totalorder %s1011_s18, 1  ;;  %s1011_s18 = sphi %s1048_s18, %s16_s18  }
   0x2   : > { %p194_p1 = scmp.lt.s32.totalorder %s1011_s18, 5 }
   0x4   : > { %p195_p2 = pnand %p792_p0, %p194_p1 }
   0x5   : > { %s793_s20 = sshll.u32 (!%p195_p2), %s1054_s19, 2  ;;  %s794_s21 = sshll.u32 (!%p195_p2), %s1054_s19, 6 }
   0x6   : > { %198 = sbr.rel (%p195_p2) target bundleno = 504 (0x1f8), region = 40  ;;  %p222_p3 = scmp.lt.s32.totalorder (!%p195_p2), %s793_s20, 15 }
   0x7   : > { %p227_p4 = scmp.lt.s32.totalorder (!%p195_p2), %s794_s21, 255  ;;  %p796_p5 = scmp.ne.s32.totalorder (!%p195_p2), %s1054_s19, 0 }
   0xb   : > { %s1162_s20 = smov (!%p222_p3, %s793_s20), 15  ;;  %s1164_s21 = smov (!%p227_p4, %s794_s21), 255 }
   0xc   : > { %s224_s24 = scalar_lea.vmem %s1155_s0, %s1162_s20  ;;  %s795_s25 = sshll.u32 %s1164_s21, 2 }
   0xd   : > { %s1069_s28 = scalar_lea.vmem %s1156_s1, %s795_s25  ;;  %236 = sbr.rel (%p796_p5) target bundleno = 20 (0x14), region = 44 }
  0x12   : > { %v1013_v0 = vmov 0.0  }
  0x13   : > { %237 = vst [vmem:[#allocation2] sm:$0x3] %v1013_v0 }
  0x14 PF: > { %v937_v1 = vld [vmem:[%s1069_s28 + $0x78] sm:$0xff]   ;;  %v941_v5 = vld [vmem:[%s1069_s28 + $0x70] sm:$0xff]   ;;  %v945_v9 = vld [vmem:[%s1069_s28 + $0x68] sm:$0xff]   ;;  %v316_v31 = vlaneseq  ;;  %v1014_v35 = vmov 1966171168   ;;  %p830_p6 = scmp.ne.s32.totalorder %s1054_s19, 3 }
  0x15   : > { %v938_v2 = vld [vmem:[%s1069_s28 + $0xf8] sm:$0xff]   ;;  %845 = vmatprep.subr.bf16.mxu0 %v937_v1  ;;  %v942_v6 = vld [vmem:[%s1069_s28 + $0xf0] sm:$0xff]   ;;  %v946_v10 = vld [vmem:[%s1069_s28 + $0xe8] sm:$0xff]   ;;  %v314_v36 = vunpack.c.l.s4 %v1014_v35 }
  0x16   : > { %v939_v3 = vld [vmem:[%s1069_s28 + $0x38] sm:$0xff]   ;;  %867 = vmatprep.subr.bf16.mxu1 %v938_v2  ;;  %v943_v7 = vld [vmem:[%s1069_s28 + $0x30] sm:$0xff]   ;;  %v947_v11 = vld [vmem:[%s1069_s28 + $0x28] sm:$0xff]   ;;  %v317_v37 = vshrl.u32 %v316_v31, 7 }
  0x17   : > { %v940_v4 = vld [vmem:[%s1069_s28 + $0xb8] sm:$0xff]   ;;  %846 = vmatpush3.bf16.msra.mxu0 %v939_v3  ;;  %v944_v8 = vld [vmem:[%s1069_s28 + $0xb0] sm:$0xff]   ;;  %v948_v12 = vld [vmem:[%s1069_s28 + $0xa8] sm:$0xff]   ;;  %v315_v39 = vunpack.c.0.s8 %v314_v36 }
  0x18   : > { %868 = vmatpush3.bf16.msra.mxu1 %v940_v4  ;;  %847 = vmatprep.subr.bf16.mxu0 %v941_v5  ;;  %v949_v13 = vld [vmem:[%s1069_s28 + $0x60] sm:$0xff]   ;;  %v953_v17 = vld [vmem:[%s1069_s28 + $0x58] sm:$0xff]   ;;  %v957_v21 = vld [vmem:[%s1069_s28 + $0x50] sm:$0xff]  }
  0x19   : > { %869 = vmatprep.subr.bf16.mxu1 %v942_v6  ;;  %v950_v14 = vld [vmem:[%s1069_s28 + $0xe0] sm:$0xff]   ;;  %v954_v18 = vld [vmem:[%s1069_s28 + $0xd8] sm:$0xff]   ;;  %v958_v22 = vld [vmem:[%s1069_s28 + $0xd0] sm:$0xff]   ;;  %v318_v40 = vsub.s32 %v315_v39, %v317_v37 }
  0x1a   : > { %v951_v15 = vld [vmem:[%s1069_s28 + $0x20] sm:$0xff]   ;;  %v955_v19 = vld [vmem:[%s1069_s28 + $0x18] sm:$0xff]   ;;  %v959_v23 = vld [vmem:[%s1069_s28 + $0x10] sm:$0xff]  }
  0x1b   : > { %848 = vmatpush3.bf16.msra.mxu0 %v943_v7  ;;  %v952_v16 = vld [vmem:[%s1069_s28 + $0xa0] sm:$0xff]   ;;  %v956_v20 = vld [vmem:[%s1069_s28 + $0x98] sm:$0xff]   ;;  %v960_v24 = vld [vmem:[%s1069_s28 + $0x90] sm:$0xff]  }
  0x1c   : > { %870 = vmatpush3.bf16.msra.mxu1 %v944_v8  ;;  %849 = vmatprep.subr.bf16.mxu0 %v945_v9  ;;  %v961_v25 = vld [vmem:[%s1069_s28 + $0x48] sm:$0xff]   ;;  %v965_v29 = vld [vmem:[%s1069_s28 + $0x40] sm:$0xff]  }
  0x1d   : > { %871 = vmatprep.subr.bf16.mxu1 %v946_v10  ;;  %v962_v26 = vld [vmem:[%s1069_s28 + $0xc8] sm:$0xff]   ;;  %v966_v30 = vld [vmem:[%s1069_s28 + $0xc0] sm:$0xff]  }
  0x1e   : > { %v963_v27 = vld [vmem:[%s1069_s28 + $0x8] sm:$0xff]   ;;  %v967_v32 = vld [vmem:[%s1069_s28] sm:$0xff]  }
  0x1f   : > { %850 = vmatpush3.bf16.msra.mxu0 %v947_v11  ;;  %v964_v28 = vld [vmem:[%s1069_s28 + $0x88] sm:$0xff]   ;;  %v968_v33 = vld [vmem:[%s1069_s28 + $0x80] sm:$0xff]  }
  0x20   : > { %872 = vmatpush3.bf16.msra.mxu1 %v948_v12  ;;  %851 = vmatprep.subr.bf16.mxu0 %v949_v13  ;;  %v797_v34 = vld.sshfl [vmem:[%s224_s24] sm:$0x33 pattern:$0x75316420] }
  0x21   : > { %873 = vmatprep.subr.bf16.mxu1 %v950_v14  ;;  %v312_v38 = vcombine.high %v797_v34, %v797_v34  ;;  %v319_v42 = vrot.slane %v797_v34, %v318_v40  ;;  %v238_v52 = vld [vmem:[#allocation2] sm:$0x3] }
  0x23   : > { %852 = vmatpush3.bf16.msra.mxu0 %v951_v15  ;;  %v326_v41 = vrot.slane %v312_v38, %v318_v40  ;;  %v327_v44 = vcombine.high %v319_v42, %v319_v42 }
  0x24   : > { %874 = vmatpush3.bf16.msra.mxu1 %v952_v16  ;;  %853 = vmatprep.subr.bf16.mxu0 %v953_v17 }
  0x25   : > { %875 = vmatprep.subr.bf16.mxu1 %v954_v18  ;;  %557 = vmatprep.mubr.bf16.mxu0 %v326_v41  ;;  %v328_v43 = vcombine.high %v326_v41, %v326_v41 }
  0x27   : > { %854 = vmatpush3.bf16.msra.mxu0 %v955_v19  ;;  %597 = vmatprep.mubr.bf16.mxu1 %v328_v43 }
  0x28   : > { %876 = vmatpush3.bf16.msra.mxu1 %v956_v20  ;;  %855 = vmatprep.subr.bf16.mxu0 %v957_v21 }
  0x29   : > { %877 = vmatprep.subr.bf16.mxu1 %v958_v22 }
  0x2b   : > { %856 = vmatpush3.bf16.msra.mxu0 %v959_v23 }
  0x2c   : > { %878 = vmatpush3.bf16.msra.mxu1 %v960_v24  ;;  %857 = vmatprep.subr.bf16.mxu0 %v961_v25 }
  0x2d   : > { %879 = vmatprep.subr.bf16.mxu1 %v962_v26 }
  0x2f   : > { %858 = vmatpush3.bf16.msra.mxu0 %v963_v27 }
  0x30   : > { %880 = vmatpush3.bf16.msra.mxu1 %v964_v28  ;;  %859 = vmatprep.subr.bf16.mxu0 %v965_v29 }
  0x31   : > { %881 = vmatprep.subr.bf16.mxu1 %v966_v30 }
  0x33   : > { %860 = vmatpush3.bf16.msra.mxu0 %v967_v32 }
  0x34   : > { %882 = vmatpush3.bf16.msra.mxu1 %v968_v33 }
  0x36   : > { %558 = vmatmul.mubr.bf16.vlgmr.msra.gmra.mxu0 %v319_v42 }
  0x37   : > { %598 = vmatmul.mubr.bf16.vlgmr.msra.gmra.mxu1 %v327_v44 }
  0xf6   : > { %v861_v45 = vpop.f32.mrf.mxu0 }
  0xf7   : > { %v883_v46 = vpop.f32.mrf.mxu1 }
  0xf8   : > { %v862_v47 = vpop.f32.mrf.mxu0 }
  0xf9   : > { %v863_v48 = vadd.f32 %v862_v47, %v861_v45  ;;  %v884_v49 = vpop.f32.mrf.mxu1 }
  0xfa   : > { %v864_v50 = vpop.f32.mrf.mxu0  ;;  %v885_v51 = vadd.f32 %v884_v49, %v883_v46 }
  0xfb   : > { %v886_v53 = vpop.f32.mrf.mxu1 }
  0xfc   : > { %v865_v54 = vpop.f32.mrf.mxu0  ;;  %v600_v55 = vadd.f32 %v885_v51, %v863_v48  ;;  %610 = sbr.rel (%p830_p6) target bundleno = 489 (0x1e9), region = 48 }
  0xfd   : > { %v887_v56 = vpop.f32.mrf.mxu1 }
  0xfe   : > { %v605_v57 = vadd.f32 %v600_v55, %v238_v52 }
 0x100   : > { %606 = vst [vmem:[#allocation2] sm:$0x3] %v605_v57 }
 0x101   : > { %v969_v58 = vld [vmem:[%s1158_s3 + $0x38] sm:$0xff]   ;;  %v1015_v59 = vmov 0.0   ;;  %v970_v60 = vld [vmem:[%s1158_s3 + $0x30] sm:$0xff]   ;;  %vm1016_vm0 = vmmov 0   ;;  %v971_v61 = vld [vmem:[%s1158_s3 + $0x28] sm:$0xff]  }
 0x102   : > { %898 = vmatprep.subr.bf16.mxu0 %v1015_v59  ;;  %914 = vmatprep.mubr.msk.bf16.mxu0 %vm1016_vm0, %v1015_v59  ;;  %v972_v62 = vld [vmem:[%s1158_s3 + $0x20] sm:$0xff]   ;;  %v973_v63 = vld [vmem:[%s1158_s3 + $0x18] sm:$0xff]   ;;  %v974_v0 = vld [vmem:[%s1158_s3 + $0x10] sm:$0xff]  }
 0x103   : > { %899 = vmatpush3.bf16.msra.mxu0 %v969_v58  ;;  %v831_v2 = vld [vmem:[%s1157_s2] ss:$0 sm:$0xff]  ;;  %v975_v4 = vld [vmem:[%s1158_s3 + $0x8] sm:$0xff]  }
 0x104   : > { %900 = vmatprep.subr.bf16.mxu0 %v1015_v59  ;;  %v976_v6 = vld [vmem:[%s1158_s3] sm:$0xff]  }
 0x105   : > { %v832_v8 = vld [vmem:[%s1159_s4] ss:$0 sm:$0xff] }
 0x107   : > { %901 = vmatpush3.bf16.msra.mxu0 %v970_v60  ;;  %v611_v1 = vld [vmem:[#allocation2] sm:$0x3] }
 0x108   : > { %902 = vmatprep.subr.bf16.mxu0 %v1015_v59  ;;  %v619_v3 = vadd.f32 %v831_v2, %v611_v1 }
 0x10a   : > { %v620_v5 = vmax.f32 %v619_v3, 0.0 }
 0x10b   : > { %903 = vmatpush3.bf16.msra.mxu0 %v971_v61 }
 0x10c   : > { %904 = vmatprep.subr.bf16.mxu0 %v1015_v59  ;;  %v621_v7 = vpack.c.bf16 %v620_v5, %v620_v5 }
 0x10f   : > { %905 = vmatpush3.bf16.msra.mxu0 %v972_v62 }
 0x110   : > { %906 = vmatprep.subr.bf16.mxu0 %v1015_v59 }
 0x113   : > { %907 = vmatpush3.bf16.msra.mxu0 %v973_v63 }
 0x114   : > { %908 = vmatprep.subr.bf16.mxu0 %v1015_v59 }
 0x117   : > { %909 = vmatpush3.bf16.msra.mxu0 %v974_v0 }
 0x118   : > { %910 = vmatprep.subr.bf16.mxu0 %v1015_v59 }
 0x11b   : > { %911 = vmatpush3.bf16.msra.mxu0 %v975_v4 }
 0x11c   : > { %912 = vmatprep.subr.bf16.mxu0 %v1015_v59 }
 0x11f   : > { %913 = vmatpush3.bf16.msra.mxu0 %v976_v6 }
 0x122   : > { %915 = vmatmul.mubr.bf16.vlgmr.msra.gmra.mxu0 %v621_v7 }
 0x1e2   : > { %v727_v9 = vpop.f32.mrf.mxu0 }
 0x1e3   : > { %v728_v10 = vadd.f32 %v832_v8, %v727_v9 }
 0x1e4   : > { %v916_v11 = vpop.f32.mrf.mxu0 }
 0x1e5   : > { %733 = vst [vmem:[#allocation3] sm:$0x3] %v728_v10 }
 0x1e6   : > { %v730_v12 = vpop.f32.mrf.mxu0 }
 0x1e8   : > { %v917_v13 = vpop.f32.mrf.mxu0 }
 0x1e9 PF: > { %p922_p7 = scmp.eq.s32.totalorder %s1054_s19, 3  ;;  %s1017_s28 = smov [#allocation3]  }
 0x1ea   : > { %s741_s29 = sshll.u32 %s1017_s28, 4  ;;  %s742_s29 = int_to_ptr.vmem [resolvable:$true] %s741_s29 }
 0x1eb   : > { %s977_s30 = scalar_lea.vmem %s742_s29, 32  ;;  %p984_p11 = scmp.lt.s32.totalorder %s742_s29, %s742_s29 }
 0x1ec   : > { %p978_p8 = scmp.ne.s32.totalorder %s742_s29, %s977_s30  ;;  %p985_p12 = scmp.lt.s32.totalorder %s977_s30, %s977_s30 }
 0x1ee   : > { %p979_p9 = pnand %p978_p8, %p922_p7  ;;  %p986_p13 = por %p985_p12, %p984_p11 }
 0x1f0   : > { %p980_p10 = pneg %p979_p9 }
 0x1f2   : > { %p987_p0 = pnand %p986_p13, %p980_p10 }
 0x1f4   : > { %990 = shalt.err (!%p987_p0)
}
 0x1f5   : > { %919 = dma.vmem_to_hbm [thread:$0]  (%p922_p7), %s742_s29, 32, %s1160_s5, [#allocation4]  }
 0x1f6   : > { %1006 = dma.done.wait (%p922_p7), [#allocation4], 32  }
 0x1f7   : > { %1008 = vsyncadd (%p922_p7), [#allocation4], 4294967264 }
 0x1f8 PF: > { %s16_s18 = sadd.s32 1, %s1011_s18  }
 0x1f9   : > { %p13_p1 = scmp.ge.s32.totalorder %s16_s18, 6  }
 0x1fb   :  { %15 = sbr.rel (!%p13_p1) target bundleno = 1 (0x1), region = 78 }
 0x200   :  { %754 = vsyncpa [#allocation4], 1 }
 0x201   :  { %756 = vsyncpa [#allocation4 + $0x1], 1 }

</bundles_post_ra>
